<compile_context>
chip_gen: v6e
topology: v6e:2x2x1
jax: 0.10.0
libtpu: 0.0.40
codegen_flags: <defaults>
</compile_context>

<pallas_src>
import functools

import jax
import jax.numpy as jnp
import numpy as np
from jax.experimental import pallas as pl
from jax.experimental.pallas import tpu as pltpu


def _round_up(x, m):
    return (x + m - 1) // m * m


def _divisors(n):
    return [d for d in range(1, n + 1) if n % d == 0]


_VMEM_BUDGET = 20 * 1024 * 1024   # per-step live-bytes target (incl. double buffers)
_VMEM_LIMIT = 32 * 1024 * 1024    # scoped VMEM limit (safe on v5e/v6e/v7x)


def _estimate_vmem(Cin, cout_t, n_slabs, H, Wp, K, out_bytes):
    R = H // n_slabs
    TL = _round_up(R * Wp, 128)
    Lh = _round_up((K - 1) * (Wp + 1) + TL, 128)
    inp = Cin * Lh * 2                  # bf16 slab, double-buffered
    wgt = K * K * cout_t * Cin * 2      # bf16 weights (constant operand)
    out = cout_t * TL * out_bytes       # output tile
    acc = cout_t * TL * 4               # f32 accumulator values
    return 2 * inp + 2 * wgt + 2 * out + 2 * acc


def _choose_tiles(N, H, Wp, Cin, Cout, K, out_bytes):
    """Pick (cout_tile, n_row_slabs) that fit the VMEM budget."""
    cout_cands = sorted([c for c in _divisors(Cout) if c == Cout or c % 8 == 0],
                        reverse=True)                 # prefer full Cout
    slab_cands = _divisors(H)                         # ascending: prefer big slabs
    for cout_t in cout_cands:
        for n_slabs in slab_cands:
            if _estimate_vmem(Cin, cout_t, n_slabs, H, Wp, K, out_bytes) <= _VMEM_BUDGET:
                # v7x has 2 TensorCores: try to expose >= 2 parallel grid blocks.
                if N * (Cout // cout_t) * n_slabs < 2:
                    for ns in slab_cands:
                        if ns >= 2 and _estimate_vmem(Cin, cout_t, ns, H, Wp, K,
                                                      out_bytes) <= _VMEM_BUDGET:
                            return cout_t, ns
                return cout_t, n_slabs
    return cout_cands[-1], H                          # last-resort smallest tiles


def _build_call(N, Cout, Cin, n_slabs, cout_t, K, Wp, TL, Lh, out_dtype):
    KK = K * K
    n_cout = Cout // cout_t

    def kernel(x_ref, w_ref, b_ref, o_ref):
        # x_ref: (1, 1, Cin, Lh)   bf16  width-padded, halo'd, flattened row slab
        # w_ref: (KK, cout_t, Cin) bf16  conv weights with BN scale folded in
        # b_ref: (cout_t, 1)       f32   fused conv-bias + BN shift
        # o_ref: (1, cout_t, TL)         lane-dense output tile
        x = x_ref[0, 0]                                   # (Cin, Lh)
        acc = None
        for i in range(KK):                               # unrolled, static shifts
            off = (i // K) * Wp + (i % K)                 # kh*Wp + kw
            part = jnp.dot(w_ref[i], x[:, off:off + TL],
                           preferred_element_type=jnp.float32)
            acc = part if acc is None else acc + part
        y = acc + b_ref[...]                              # fused bias
        o_ref[0] = jnp.maximum(y, 0.0).astype(o_ref.dtype)  # ReLU

    out_bytes = jnp.dtype(out_dtype).itemsize
    flops = 2 * N * Cout * Cin * KK * n_slabs * TL
    bytes_accessed = (N * n_slabs * n_cout * Cin * Lh * 2
                      + KK * Cout * Cin * 2
                      + N * Cout * n_slabs * TL * out_bytes)

    return pl.pallas_call(
        kernel,
        out_shape=jax.ShapeDtypeStruct((N, Cout, n_slabs * TL), out_dtype),
        grid=(N, n_cout, n_slabs),
        in_specs=[
            pl.BlockSpec((1, 1, Cin, Lh), lambda n, co, s: (n, s, 0, 0)),
            pl.BlockSpec((KK, cout_t, Cin), lambda n, co, s: (0, co, 0)),
            pl.BlockSpec((cout_t, 1), lambda n, co, s: (co, 0)),
        ],
        out_specs=pl.BlockSpec((1, cout_t, TL), lambda n, co, s: (n, co, s)),
        compiler_params=pltpu.CompilerParams(
            dimension_semantics=("parallel", "parallel", "parallel"),
            vmem_limit_bytes=_VMEM_LIMIT),
        cost_estimate=pl.CostEstimate(flops=flops, transcendentals=0,
                                      bytes_accessed=bytes_accessed),
    )


@functools.partial(jax.jit, static_argnames=("out_dtype",))
def conv_bn_relu(x_nchw, w_oihw, conv_bias, gamma, beta, run_mean, run_var,
                 eps=1e-5, out_dtype=None):
    """ConvBNReLU forward. x_nchw: (N, Cin, H, W) -> (N, Cout, H, W)."""
    N, Cin, H, W = x_nchw.shape
    Cout, Cin_w, K, K2 = w_oihw.shape
    assert K == K2 and K % 2 == 1 and Cin_w == Cin
    pad = (K - 1) // 2
    Wp = W + 2 * pad
    out_dtype = x_nchw.dtype if out_dtype is None else out_dtype

    cout_t, n_slabs = _choose_tiles(N, H, Wp, Cin, Cout, K,
                                    jnp.dtype(out_dtype).itemsize)
    R = H // n_slabs
    TL = _round_up(R * Wp, 128)                       # lane-dense output tile width
    Lh = _round_up((K - 1) * (Wp + 1) + TL, 128)      # halo'd flat slab length

    # --- fold BN scale into weights, conv bias + BN shift into one bias -------
    scale = gamma * jax.lax.rsqrt(run_var + eps)                      # (Cout,)
    bias = (conv_bias - run_mean) * scale + beta                      # (Cout,)
    w_scaled = (w_oihw * scale[:, None, None, None]).astype(jnp.bfloat16)
    w_mat = jnp.transpose(w_scaled, (2, 3, 0, 1)).reshape(K * K, Cout, Cin)

    # --- zero-pad image; build halo'd, width-padded, flattened row slabs ------
    x_pad = jnp.pad(x_nchw, ((0, 0), (0, 0), (pad, pad), (pad, pad)))
    x_pad = x_pad.astype(jnp.bfloat16)                                # (N,Cin,Hp,Wp)
    slab_rows = R + K - 1
    if n_slabs == 1:
        slabs = x_pad[:, None]                                        # (N,1,Cin,Hp,Wp)
    else:
        slabs = jnp.stack(
            [x_pad[:, :, s * R:s * R + slab_rows, :] for s in range(n_slabs)],
            axis=1)                                                   # (K-1)-row halo
    slabs = slabs.reshape(N, n_slabs, Cin, slab_rows * Wp)
    slabs = jnp.pad(slabs, ((0, 0), (0, 0), (0, 0), (0, Lh - slab_rows * Wp)))

    call = _build_call(N, Cout, Cin, n_slabs, cout_t, K, Wp, TL, Lh, out_dtype)
    y = call(slabs, w_mat, bias.reshape(Cout, 1).astype(jnp.float32))

    # (N, Cout, n_slabs*TL) -> (N, Cout, H, W): drop lane padding + width padding.
    y = y.reshape(N, Cout, n_slabs, TL)[:, :, :, :R * Wp]
    return y.reshape(N, Cout, H, Wp)[:, :, :, :W]


def _reference(x, w, conv_bias, gamma, beta, run_mean, run_var, eps=1e-5):
    # Matches kernel numerics: BN scale folded into bf16 weights, bf16 inputs,
    # f32 accumulation, fused bias, ReLU.
    K = w.shape[2]
    pad = (K - 1) // 2
    scale = gamma / jnp.sqrt(run_var + eps)
    bias = (conv_bias - run_mean) * scale + beta
    xq = x.astype(jnp.bfloat16).astype(jnp.float32)
    wq = (w * scale[:, None, None, None]).astype(jnp.bfloat16).astype(jnp.float32)
    y = jax.lax.conv_general_dilated(
        xq, wq, window_strides=(1, 1), padding=((pad, pad), (pad, pad)),
        dimension_numbers=("NCHW", "OIHW", "NCHW"),
        precision=jax.lax.Precision.HIGHEST)
    y = y + bias.reshape(1, -1, 1, 1)
    return jnp.maximum(y, 0.0)


if __name__ == "__main__":
    N, Cin, Cout, H, W, K = 2, 4, 8, 16, 16, 3

    key = jax.random.PRNGKey(0)
    k_x, k_w, k_b, k_g, k_be, k_m, k_v = jax.random.split(key, 7)

    x = jax.random.normal(k_x, (N, Cin, H, W), dtype=jnp.float32)
    # Conv2d(nIn=4, nOut=8, ksize=3, stride=1, pad=1, bias=True) parameters.
    w = jax.random.normal(k_w, (Cout, Cin, K, K), dtype=jnp.float32) * 0.1
    conv_bias = jax.random.normal(k_b, (Cout,), dtype=jnp.float32) * 0.1
    # BatchNorm2d(nOut=8) parameters / running stats (eval-mode semantics).
    gamma = 1.0 + 0.1 * jax.random.normal(k_g, (Cout,), dtype=jnp.float32)
    beta = 0.1 * jax.random.normal(k_be, (Cout,), dtype=jnp.float32)
    run_mean = 0.1 * jax.random.normal(k_m, (Cout,), dtype=jnp.float32)
    run_var = 1.0 + 0.1 * jnp.abs(
        jax.random.normal(k_v, (Cout,), dtype=jnp.float32))

    out = conv_bn_relu(x, w, conv_bias, gamma, beta, run_mean, run_var)
    out = jax.block_until_ready(out)

    ref = jax.block_until_ready(
        _reference(x, w, conv_bias, gamma, beta, run_mean, run_var))
    assert out.shape == (N, Cout, H, W)
    assert np.allclose(np.asarray(out), np.asarray(ref), atol=2e-3, rtol=2e-3)

    print("KERNEL_OK")
</pallas_src>

<mosaic_0001>
module attributes {stable_mosaic.version = 11 : i64} {
  func.func @kernel(%arg0: i32, %arg1: i32, %arg2: i32, %arg3: memref<1x1x4x512xbf16, #tpu.memory_space<vmem>>, %arg4: memref<9x8x4xbf16, #tpu.memory_space<vmem>>, %arg5: memref<8x1xf32, #tpu.memory_space<vmem>>, %arg6: memref<1x8x384xf32, #tpu.memory_space<vmem>>) attributes {dimension_semantics = [#tpu.dimension_semantics<parallel>, #tpu.dimension_semantics<parallel>, #tpu.dimension_semantics<parallel>], iteration_bounds = array<i64: 2, 1, 1>, scalar_prefetch = 0 : i64, scratch_operands = 0 : i64, tpu.core_type = #tpu.core_type<tc>, window_params = [{transform_indices = @transform_0, window_bounds = array<i64: 1, 1, 4, 512>}, {transform_indices = @transform_1, window_bounds = array<i64: 9, 8, 4>}, {transform_indices = @transform_2, window_bounds = array<i64: 8, 1>}, {transform_indices = @transform_3, window_bounds = array<i64: 1, 8, 384>}]} {
    %c0 = arith.constant 0 : index
    %c0_0 = arith.constant 0 : index
    %c0_1 = arith.constant 0 : index
    %c0_2 = arith.constant 0 : index
    %0 = vector.load %arg3[%c0, %c0_0, %c0_1, %c0_2] : memref<1x1x4x512xbf16, #tpu.memory_space<vmem>>, vector<1x1x4x512xbf16>
    %1 = vector.shape_cast %0 : vector<1x1x4x512xbf16> to vector<4x512xbf16>
    %c0_3 = arith.constant 0 : index
    %c0_4 = arith.constant 0 : index
    %c0_5 = arith.constant 0 : index
    %2 = vector.load %arg4[%c0_3, %c0_4, %c0_5] : memref<9x8x4xbf16, #tpu.memory_space<vmem>>, vector<1x8x4xbf16>
    %3 = vector.shape_cast %2 : vector<1x8x4xbf16> to vector<8x4xbf16>
    %4 = vector.extract_strided_slice %1 {offsets = [0, 0], sizes = [4, 384], strides = [1, 1]} : vector<4x512xbf16> to vector<4x384xbf16>
    %cst = arith.constant dense<0.000000e+00> : vector<8x384xf32>
    %5 = tpu.matmul %3, %4, %cst {dimension_numbers = #tpu.dot_dimension_numbers<[1], [0], [0], [1], [0, 0, 1, 1], [], []>} : vector<8x4xbf16>, vector<4x384xbf16>, vector<8x384xf32> -> vector<8x384xf32>
    %c1 = arith.constant 1 : index
    %c0_6 = arith.constant 0 : index
    %c0_7 = arith.constant 0 : index
    %6 = vector.load %arg4[%c1, %c0_6, %c0_7] : memref<9x8x4xbf16, #tpu.memory_space<vmem>>, vector<1x8x4xbf16>
    %7 = vector.shape_cast %6 : vector<1x8x4xbf16> to vector<8x4xbf16>
    %8 = vector.extract_strided_slice %1 {offsets = [0, 1], sizes = [4, 384], strides = [1, 1]} : vector<4x512xbf16> to vector<4x384xbf16>
    %cst_8 = arith.constant dense<0.000000e+00> : vector<8x384xf32>
    %9 = tpu.matmul %7, %8, %cst_8 {dimension_numbers = #tpu.dot_dimension_numbers<[1], [0], [0], [1], [0, 0, 1, 1], [], []>} : vector<8x4xbf16>, vector<4x384xbf16>, vector<8x384xf32> -> vector<8x384xf32>
    %10 = arith.addf %5, %9 : vector<8x384xf32>
    %c2 = arith.constant 2 : index
    %c0_9 = arith.constant 0 : index
    %c0_10 = arith.constant 0 : index
    %11 = vector.load %arg4[%c2, %c0_9, %c0_10] : memref<9x8x4xbf16, #tpu.memory_space<vmem>>, vector<1x8x4xbf16>
    %12 = vector.shape_cast %11 : vector<1x8x4xbf16> to vector<8x4xbf16>
    %13 = vector.extract_strided_slice %1 {offsets = [0, 2], sizes = [4, 384], strides = [1, 1]} : vector<4x512xbf16> to vector<4x384xbf16>
    %cst_11 = arith.constant dense<0.000000e+00> : vector<8x384xf32>
    %14 = tpu.matmul %12, %13, %cst_11 {dimension_numbers = #tpu.dot_dimension_numbers<[1], [0], [0], [1], [0, 0, 1, 1], [], []>} : vector<8x4xbf16>, vector<4x384xbf16>, vector<8x384xf32> -> vector<8x384xf32>
    %15 = arith.addf %10, %14 : vector<8x384xf32>
    %c3 = arith.constant 3 : index
    %c0_12 = arith.constant 0 : index
    %c0_13 = arith.constant 0 : index
    %16 = vector.load %arg4[%c3, %c0_12, %c0_13] : memref<9x8x4xbf16, #tpu.memory_space<vmem>>, vector<1x8x4xbf16>
    %17 = vector.shape_cast %16 : vector<1x8x4xbf16> to vector<8x4xbf16>
    %18 = vector.extract_strided_slice %1 {offsets = [0, 18], sizes = [4, 384], strides = [1, 1]} : vector<4x512xbf16> to vector<4x384xbf16>
    %cst_14 = arith.constant dense<0.000000e+00> : vector<8x384xf32>
    %19 = tpu.matmul %17, %18, %cst_14 {dimension_numbers = #tpu.dot_dimension_numbers<[1], [0], [0], [1], [0, 0, 1, 1], [], []>} : vector<8x4xbf16>, vector<4x384xbf16>, vector<8x384xf32> -> vector<8x384xf32>
    %20 = arith.addf %15, %19 : vector<8x384xf32>
    %c4 = arith.constant 4 : index
    %c0_15 = arith.constant 0 : index
    %c0_16 = arith.constant 0 : index
    %21 = vector.load %arg4[%c4, %c0_15, %c0_16] : memref<9x8x4xbf16, #tpu.memory_space<vmem>>, vector<1x8x4xbf16>
    %22 = vector.shape_cast %21 : vector<1x8x4xbf16> to vector<8x4xbf16>
    %23 = vector.extract_strided_slice %1 {offsets = [0, 19], sizes = [4, 384], strides = [1, 1]} : vector<4x512xbf16> to vector<4x384xbf16>
    %cst_17 = arith.constant dense<0.000000e+00> : vector<8x384xf32>
    %24 = tpu.matmul %22, %23, %cst_17 {dimension_numbers = #tpu.dot_dimension_numbers<[1], [0], [0], [1], [0, 0, 1, 1], [], []>} : vector<8x4xbf16>, vector<4x384xbf16>, vector<8x384xf32> -> vector<8x384xf32>
    %25 = arith.addf %20, %24 : vector<8x384xf32>
    %c5 = arith.constant 5 : index
    %c0_18 = arith.constant 0 : index
    %c0_19 = arith.constant 0 : index
    %26 = vector.load %arg4[%c5, %c0_18, %c0_19] : memref<9x8x4xbf16, #tpu.memory_space<vmem>>, vector<1x8x4xbf16>
    %27 = vector.shape_cast %26 : vector<1x8x4xbf16> to vector<8x4xbf16>
    %28 = vector.extract_strided_slice %1 {offsets = [0, 20], sizes = [4, 384], strides = [1, 1]} : vector<4x512xbf16> to vector<4x384xbf16>
    %cst_20 = arith.constant dense<0.000000e+00> : vector<8x384xf32>
    %29 = tpu.matmul %27, %28, %cst_20 {dimension_numbers = #tpu.dot_dimension_numbers<[1], [0], [0], [1], [0, 0, 1, 1], [], []>} : vector<8x4xbf16>, vector<4x384xbf16>, vector<8x384xf32> -> vector<8x384xf32>
    %30 = arith.addf %25, %29 : vector<8x384xf32>
    %c6 = arith.constant 6 : index
    %c0_21 = arith.constant 0 : index
    %c0_22 = arith.constant 0 : index
    %31 = vector.load %arg4[%c6, %c0_21, %c0_22] : memref<9x8x4xbf16, #tpu.memory_space<vmem>>, vector<1x8x4xbf16>
    %32 = vector.shape_cast %31 : vector<1x8x4xbf16> to vector<8x4xbf16>
    %33 = vector.extract_strided_slice %1 {offsets = [0, 36], sizes = [4, 384], strides = [1, 1]} : vector<4x512xbf16> to vector<4x384xbf16>
    %cst_23 = arith.constant dense<0.000000e+00> : vector<8x384xf32>
    %34 = tpu.matmul %32, %33, %cst_23 {dimension_numbers = #tpu.dot_dimension_numbers<[1], [0], [0], [1], [0, 0, 1, 1], [], []>} : vector<8x4xbf16>, vector<4x384xbf16>, vector<8x384xf32> -> vector<8x384xf32>
    %35 = arith.addf %30, %34 : vector<8x384xf32>
    %c7 = arith.constant 7 : index
    %c0_24 = arith.constant 0 : index
    %c0_25 = arith.constant 0 : index
    %36 = vector.load %arg4[%c7, %c0_24, %c0_25] : memref<9x8x4xbf16, #tpu.memory_space<vmem>>, vector<1x8x4xbf16>
    %37 = vector.shape_cast %36 : vector<1x8x4xbf16> to vector<8x4xbf16>
    %38 = vector.extract_strided_slice %1 {offsets = [0, 37], sizes = [4, 384], strides = [1, 1]} : vector<4x512xbf16> to vector<4x384xbf16>
    %cst_26 = arith.constant dense<0.000000e+00> : vector<8x384xf32>
    %39 = tpu.matmul %37, %38, %cst_26 {dimension_numbers = #tpu.dot_dimension_numbers<[1], [0], [0], [1], [0, 0, 1, 1], [], []>} : vector<8x4xbf16>, vector<4x384xbf16>, vector<8x384xf32> -> vector<8x384xf32>
    %40 = arith.addf %35, %39 : vector<8x384xf32>
    %c8 = arith.constant 8 : index
    %c0_27 = arith.constant 0 : index
    %c0_28 = arith.constant 0 : index
    %41 = vector.load %arg4[%c8, %c0_27, %c0_28] : memref<9x8x4xbf16, #tpu.memory_space<vmem>>, vector<1x8x4xbf16>
    %42 = vector.shape_cast %41 : vector<1x8x4xbf16> to vector<8x4xbf16>
    %43 = vector.extract_strided_slice %1 {offsets = [0, 38], sizes = [4, 384], strides = [1, 1]} : vector<4x512xbf16> to vector<4x384xbf16>
    %cst_29 = arith.constant dense<0.000000e+00> : vector<8x384xf32>
    %44 = tpu.matmul %42, %43, %cst_29 {dimension_numbers = #tpu.dot_dimension_numbers<[1], [0], [0], [1], [0, 0, 1, 1], [], []>} : vector<8x4xbf16>, vector<4x384xbf16>, vector<8x384xf32> -> vector<8x384xf32>
    %45 = arith.addf %40, %44 : vector<8x384xf32>
    %c0_30 = arith.constant 0 : index
    %c0_31 = arith.constant 0 : index
    %46 = vector.load %arg5[%c0_30, %c0_31] : memref<8x1xf32, #tpu.memory_space<vmem>>, vector<8x1xf32>
    %47 = vector.broadcast %46 : vector<8x1xf32> to vector<8x384xf32>
    %48 = arith.addf %45, %47 : vector<8x384xf32>
    %cst_32 = arith.constant 0.000000e+00 : f32
    %49 = vector.broadcast %cst_32 : f32 to vector<8x384xf32>
    %50 = arith.maximumf %48, %49 : vector<8x384xf32>
    %c0_33 = arith.constant 0 : index
    %c0_34 = arith.constant 0 : index
    %c0_35 = arith.constant 0 : index
    %51 = vector.load %arg6[%c0_33, %c0_34, %c0_35] : memref<1x8x384xf32, #tpu.memory_space<vmem>>, vector<1x8x384xf32>
    %52 = vector.shape_cast %51 : vector<1x8x384xf32> to vector<8x384xf32>
    %53 = vector.shape_cast %50 : vector<8x384xf32> to vector<1x8x384xf32>
    tpu.vector_store %arg6[%c0_33, %c0_34, %c0_35], %53 {strides = array<i32>} : memref<1x8x384xf32, #tpu.memory_space<vmem>>, vector<1x8x384xf32>,
    return
  }
  func.func @transform_0(%arg0: i32, %arg1: i32, %arg2: i32) -> (i32, i32, i32, i32) {
    %c0_i32 = arith.constant 0 : i32
    %c0_i32_0 = arith.constant 0 : i32
    %c0_i32_1 = arith.constant 0 : i32
    return %arg0, %arg2, %c0_i32, %c0_i32_0 : i32, i32, i32, i32
  }
  func.func @transform_1(%arg0: i32, %arg1: i32, %arg2: i32) -> (i32, i32, i32) {
    %c0_i32 = arith.constant 0 : i32
    %c0_i32_0 = arith.constant 0 : i32
    %c0_i32_1 = arith.constant 0 : i32
    return %c0_i32, %arg1, %c0_i32_0 : i32, i32, i32
  }
  func.func @transform_2(%arg0: i32, %arg1: i32, %arg2: i32) -> (i32, i32) {
    %c0_i32 = arith.constant 0 : i32
    %c0_i32_0 = arith.constant 0 : i32
    return %arg1, %c0_i32 : i32, i32
  }
  func.func @transform_3(%arg0: i32, %arg1: i32, %arg2: i32) -> (i32, i32, i32) {
    %c0_i32 = arith.constant 0 : i32
    return %arg0, %arg1, %arg2 : i32, i32, i32
  }
}

</mosaic_0001>

<bundles_post_ra>
// kernel: conv_bn_relu.1
= control target key start
LH: loop header
LB: loop body
LE: loop exit
PB: predicated region body
PF: predicated region fallthrough
CT: control target
= control target key end

     0   :  { %s1621_s12 = smov 0   ;;  %s1623_s13 = smov 0   ;;  %s1796_s0 = inlined_call_operand.vmem [shape: bf16[2,1,4,512], index: 0, kind: input, shape index: {}]   ;;  %s1797_s1 = inlined_call_operand.vmem [shape: bf16[9,8,4], index: 1, kind: input, shape index: {}]   ;;  %s1798_s2 = inlined_call_operand.vmem [shape: f32[8,1], index: 2, kind: input, shape index: {}]   ;;  %s1799_s3 = inlined_call_operand.vmem [shape: f32[2,8,384], index: 3, kind: output, shape index: {}]  }
   0x1   :  { %s1625_s14 = smov 0  }
   0x2 LB: > { %s32_s15 = sadd.s32 1, %s1583_s13  ;;  %p1412_p0 = scmp.ge.s32.totalorder %s1587_s14, 1  ;;  %s1587_s14 = sphi %s1625_s14, %s13_s14   ;;  %s1583_s13 = sphi %s1623_s13, %s1801_s13   ;;  %s1579_s12 = sphi %s1621_s12, %s1800_s12  }
   0x3   : > { %p34_p1 = scmp.ge.s32.totalorder %s32_s15, 2  ;;  %p184_p2 = scmp.lt.s32.totalorder %s1587_s14, 3 }
   0x5   : > { %s1803_s15 = smov (%p34_p1, %s32_s15), 0  ;;  %p185_p3 = pnand %p1412_p0, %p184_p2 }
   0x6   : > { %p228_p4 = scmp.lt.s32.totalorder (!%p185_p3), %s1579_s12, 1  ;;  %s1593_s20 = smov (!%p185_p3), 127  }
   0x7   : > { %188 = sbr.rel (%p185_p3) target bundleno = 411 (0x19b), region = 32  ;;  %s1594_s21 = smov (!%p185_p3), 126  }
   0x8   : > { %s1595_s22 = smov (!%p185_p3), 110   ;;  %s1596_s23 = smov (!%p185_p3), 109  }
   0x9   : > { %s1597_s24 = smov (!%p185_p3), 108   ;;  %s1598_s25 = smov (!%p185_p3), 92  }
   0xa   : > { %s1599_s26 = smov (!%p185_p3), 91   ;;  %s1600_s27 = smov (!%p185_p3), 90  }
   0xc   : > { %v269_v0 = vlaneseq  ;;  %v1589_v1 = vmov 1983009808   ;;  %s1805_s12 = smov (!%p228_p4, %s1579_s12), 1  ;;  %v1590_v5 = vmov 0.0   ;;  %v1591_v6 = vmov 0   ;;  %v1252_v14 = vld [vmem:[%s1798_s2] sm:$0xff] }
   0xd   : > { %v267_v2 = vunpack.c.l.s4 %v1589_v1  ;;  %1472 = vmatprep.subr.bf16.mxu1 %v1590_v5  ;;  %340 = vmatprep.mubr.bf16.mxu0 %v1591_v6  ;;  %s1453_s16 = sshll.u32 %s1805_s12, 3  ;;  %vm1592_vm0 = vmmov 0   ;;  %vm290_vm1 = vcmask 1039360   ;;  %vm298_vm2 = vcmask 1041408   ;;  %v1416_v23 = vld [vmem:[%s1797_s1 + $0x4] sm:$0xf] }
   0xe   : > { %v270_v3 = vshrl.u32 %v269_v0, 7  ;;  %1563 = vset.pattern.permute.xlu0 %v1591_v6  ;;  %s236_s19 = scalar_lea.vmem %s1796_s0, %s1453_s16  ;;  %1474 = vmatprep.mubr.msk.bf16.mxu1 %vm1592_vm0, %v1590_v5  ;;  %vm294_vm3 = vcmask 31744   ;;  %vm492_vm4 = vcmask 1031168   ;;  %v261_v34 = vld [vmem:[%s1797_s1] sm:$0xf]  ;;  %vm602_vm5 = vcmask 900096  }
   0xf   : > { %v268_v4 = vunpack.c.0.s8 %v267_v2  ;;  %v260_v8 = vld [vmem:[%s236_s19] sm:$0xff]  ;;  %v1423_v44 = vld [vmem:[%s1797_s1 + $0x8] sm:$0xf]  ;;  %vm712_vm6 = vcmask 891904   ;;  %v1427_v54 = vld [vmem:[%s1797_s1 + $0xc] sm:$0xf] }
  0x10   : > { %v265_v10 = vcombine.high %v260_v8, %v260_v8  ;;  %vm822_vm7 = vcmask 883712   ;;  %v1431_v0 = vld [vmem:[%s1797_s1 + $0x10] sm:$0xf]  ;;  %vm932_vm8 = vcmask 752640   ;;  %vm1042_vm9 = vcmask 744448  }
  0x11   : > { %v271_v7 = vsub.s32 %v268_v4, %v270_v3  ;;  %vm1152_vm10 = vcmask 736256  }
  0x13   : > { %v1650_v9 = vrot.slane %v260_v8, %v271_v7  ;;  %v1653_v11 = vrot.slane %v265_v10, %v271_v7 }
  0x15   : > { %282 = vrot.lane.b32.xlu0 %v1650_v9, %s1593_s20  ;;  %v280_v12 = vcombine.high %v1650_v9, %v1650_v9  ;;  %286 = vrot.lane.b32.xlu1 %v1653_v11, %s1593_s20  ;;  %v281_v13 = vcombine.high %v1653_v11, %v1653_v11  ;;  %v393_v26 = vsel %vm298_vm2, %v1650_v9, 0  ;;  %v399_v28 = vsel %vm298_vm2, %v1653_v11, 0 }
  0x19   : > { %284 = vrot.lane.b32.xlu0 %v280_v12, %s1593_s20  ;;  %288 = vrot.lane.b32.xlu1 %v281_v13, %s1593_s20 }
  0x1d   : > { %484 = vrot.lane.b32.xlu0 %v1650_v9, %s1594_s21  ;;  %486 = vrot.lane.b32.xlu1 %v280_v12, %s1594_s21 }
  0x21   : > { %488 = vrot.lane.b32.xlu0 %v1653_v11, %s1594_s21  ;;  %490 = vrot.lane.b32.xlu1 %v281_v13, %s1594_s21 }
  0x25   : > { %594 = vrot.lane.b32.xlu0 %v1650_v9, %s1595_s22  ;;  %596 = vrot.lane.b32.xlu1 %v280_v12, %s1595_s22 }
  0x29   : > { %598 = vrot.lane.b32.xlu0 %v1653_v11, %s1595_s22  ;;  %600 = vrot.lane.b32.xlu1 %v281_v13, %s1595_s22 }
  0x2d   : > { %704 = vrot.lane.b32.xlu0 %v1650_v9, %s1596_s23  ;;  %706 = vrot.lane.b32.xlu1 %v280_v12, %s1596_s23 }
  0x31   : > { %708 = vrot.lane.b32.xlu0 %v1653_v11, %s1596_s23  ;;  %710 = vrot.lane.b32.xlu1 %v281_v13, %s1596_s23 }
  0x35   : > { %814 = vrot.lane.b32.xlu0 %v1650_v9, %s1597_s24  ;;  %816 = vrot.lane.b32.xlu1 %v280_v12, %s1597_s24 }
  0x39   : > { %818 = vrot.lane.b32.xlu0 %v1653_v11, %s1597_s24  ;;  %820 = vrot.lane.b32.xlu1 %v281_v13, %s1597_s24 }
  0x3d   : > { %924 = vrot.lane.b32.xlu0 %v1650_v9, %s1598_s25  ;;  %926 = vrot.lane.b32.xlu1 %v280_v12, %s1598_s25 }
  0x41   : > { %928 = vrot.lane.b32.xlu0 %v1653_v11, %s1598_s25  ;;  %930 = vrot.lane.b32.xlu1 %v281_v13, %s1598_s25  ;;  %s1526_s25 = smul.u32 24, %s1805_s12 }
  0x43   : > { %s257_s28 = scalar_lea.vmem %s1799_s3, %s1526_s25 }
  0x45   : > { %1034 = vrot.lane.b32.xlu0 %v1650_v9, %s1599_s26  ;;  %1036 = vrot.lane.b32.xlu1 %v280_v12, %s1599_s26 }
  0x49   : > { %1038 = vrot.lane.b32.xlu0 %v1653_v11, %s1599_s26  ;;  %1040 = vrot.lane.b32.xlu1 %v281_v13, %s1599_s26 }
  0x4d   : > { %1144 = vrot.lane.b32.xlu0 %v1650_v9, %s1600_s27  ;;  %1146 = vrot.lane.b32.xlu1 %v280_v12, %s1600_s27 }
  0x51   : > { %1148 = vrot.lane.b32.xlu0 %v1653_v11, %s1600_s27  ;;  %1150 = vrot.lane.b32.xlu1 %v281_v13, %s1600_s27 }
  0x55   : > { %1255 = vperm.xlu0 %1563, %v1252_v14  }
  0x87   : > { %v283_v15 = vpop.permute.xlu0 %282  ;;  %v287_v16 = vpop.permute.xlu1 %286 }
  0x8b   : > { %v285_v17 = vpop.permute.xlu0 %284  ;;  %v289_v20 = vpop.permute.xlu1 %288 }
  0x8c   : > { %v292_v18 = vsel %vm290_vm1, %v285_v17, %v287_v16  ;;  %v291_v19 = vsel %vm290_vm1, %v283_v15, %v285_v17  ;;  %v293_v22 = vsel %vm290_vm1, %v287_v16, %v289_v20 }
  0x8d   : > { %1417 = vmatprep.subr.msk.bf16.mxu0 %vm298_vm2, %v292_v18  ;;  %v300_v21 = vsel %vm298_vm2, %v291_v19, 0  ;;  %v306_v24 = vsel %vm298_vm2, %v293_v22, 0  ;;  %v1439_v22 = vld [vmem:[%s1797_s1 + $0x18] sm:$0xf] }
  0x8e   : > { %323 = vmatpush1.bf16.msra.mxu0 %v300_v21  ;;  %1473 = vmatpush3.bf16.msra.mxu1 %v306_v24 }
  0x8f   : > { %v485_v25 = vpop.permute.xlu0 %484  ;;  %1420 = vmatprep.subr.msk.bf16.mxu0 %vm298_vm2, %v280_v12  ;;  %1478 = vmatprep.subr.bf16.mxu1 %v1590_v5  ;;  %v487_v27 = vpop.permute.xlu1 %486  ;;  %v1435_v12 = vld [vmem:[%s1797_s1 + $0x14] sm:$0xf] }
  0x90   : > { %v493_v30 = vsel %vm492_vm4, %v485_v25, %v487_v27 }
  0x91   : > { %1418 = vmatmul.mubr.msk.bf16.vlgmr.msra.gmra.mxu0 %vm294_vm3, %v1416_v23  ;;  %1475 = vmatmul.mubr.msk.bf16.vlgmr.msra.gmra.mxu1 %vm294_vm3, %v1416_v23  ;;  %v500_v35 = vsel %vm298_vm2, %v493_v30, 0 }
  0x92   : > { %416 = vmatpush1.bf16.msra.mxu0 %v393_v26  ;;  %433 = vmatprep.mubr.bf16.mxu0 %v1591_v6 }
  0x93   : > { %v489_v29 = vpop.permute.xlu0 %488  ;;  %1479 = vmatpush3.bf16.msra.mxu1 %v399_v28  ;;  %1480 = vmatprep.mubr.msk.bf16.mxu1 %vm1592_vm0, %v1590_v5  ;;  %v491_v32 = vpop.permute.xlu1 %490 }
  0x94   : > { %v494_v31 = vsel %vm492_vm4, %v487_v27, %v489_v29  ;;  %1484 = vmatprep.subr.bf16.mxu1 %v1590_v5  ;;  %v495_v33 = vsel %vm492_vm4, %v489_v29, %v491_v32  ;;  %v1443_v32 = vld [vmem:[%s1797_s1 + $0x1c] sm:$0xf] }
  0x95   : > { %1424 = vmatprep.subr.msk.bf16.mxu0 %vm298_vm2, %v494_v31  ;;  %v506_v37 = vsel %vm298_vm2, %v495_v33, 0 }
  0x97   : > { %v595_v36 = vpop.permute.xlu0 %594  ;;  %v597_v38 = vpop.permute.xlu1 %596 }
  0x98   : > { %v603_v40 = vsel %vm602_vm5, %v595_v36, %v597_v38 }
  0x99   : > { %1421 = vmatmul.mubr.msk.bf16.vlgmr.msra.gmra.mxu0 %vm294_vm3, %v261_v34  ;;  %1481 = vmatmul.mubr.msk.bf16.vlgmr.msra.gmra.mxu1 %vm294_vm3, %v261_v34  ;;  %v610_v45 = vsel %vm298_vm2, %v603_v40, 0 }
  0x9a   : > { %523 = vmatpush1.bf16.msra.mxu0 %v500_v35  ;;  %540 = vmatprep.mubr.bf16.mxu0 %v1591_v6  ;;  %v1447_v35 = vld [vmem:[%s1797_s1 + $0x20] sm:$0xf] }
  0x9b   : > { %v599_v39 = vpop.permute.xlu0 %598  ;;  %1485 = vmatpush3.bf16.msra.mxu1 %v506_v37  ;;  %1486 = vmatprep.mubr.msk.bf16.mxu1 %vm1592_vm0, %v1590_v5  ;;  %v601_v42 = vpop.permute.xlu1 %600 }
  0x9c   : > { %v604_v41 = vsel %vm602_vm5, %v597_v38, %v599_v39  ;;  %1490 = vmatprep.subr.bf16.mxu1 %v1590_v5  ;;  %v605_v43 = vsel %vm602_vm5, %v599_v39, %v601_v42 }
  0x9d   : > { %1428 = vmatprep.subr.msk.bf16.mxu0 %vm298_vm2, %v604_v41  ;;  %v616_v47 = vsel %vm298_vm2, %v605_v43, 0 }
  0x9f   : > { %v705_v46 = vpop.permute.xlu0 %704  ;;  %v707_v48 = vpop.permute.xlu1 %706 }
  0xa0   : > { %v713_v50 = vsel %vm712_vm6, %v705_v46, %v707_v48 }
  0xa1   : > { %1425 = vmatmul.mubr.msk.bf16.vlgmr.msra.gmra.mxu0 %vm294_vm3, %v1423_v44  ;;  %1487 = vmatmul.mubr.msk.bf16.vlgmr.msra.gmra.mxu1 %vm294_vm3, %v1423_v44  ;;  %v720_v55 = vsel %vm298_vm2, %v713_v50, 0 }
  0xa2   : > { %633 = vmatpush1.bf16.msra.mxu0 %v610_v45  ;;  %650 = vmatprep.mubr.bf16.mxu0 %v1591_v6 }
  0xa3   : > { %v709_v49 = vpop.permute.xlu0 %708  ;;  %1491 = vmatpush3.bf16.msra.mxu1 %v616_v47  ;;  %1492 = vmatprep.mubr.msk.bf16.mxu1 %vm1592_vm0, %v1590_v5  ;;  %v711_v52 = vpop.permute.xlu1 %710 }
  0xa4   : > { %v714_v51 = vsel %vm712_vm6, %v707_v48, %v709_v49  ;;  %1496 = vmatprep.subr.bf16.mxu1 %v1590_v5  ;;  %v715_v53 = vsel %vm712_vm6, %v709_v49, %v711_v52 }
  0xa5   : > { %1432 = vmatprep.subr.msk.bf16.mxu0 %vm298_vm2, %v714_v51  ;;  %v726_v57 = vsel %vm298_vm2, %v715_v53, 0 }
  0xa7   : > { %v815_v56 = vpop.permute.xlu0 %814  ;;  %v817_v58 = vpop.permute.xlu1 %816 }
  0xa8   : > { %v823_v60 = vsel %vm822_vm7, %v815_v56, %v817_v58 }
  0xa9   : > { %1429 = vmatmul.mubr.msk.bf16.vlgmr.msra.gmra.mxu0 %vm294_vm3, %v1427_v54  ;;  %1493 = vmatmul.mubr.msk.bf16.vlgmr.msra.gmra.mxu1 %vm294_vm3, %v1427_v54  ;;  %v830_v1 = vsel %vm298_vm2, %v823_v60, 0 }
  0xaa   : > { %743 = vmatpush1.bf16.msra.mxu0 %v720_v55  ;;  %760 = vmatprep.mubr.bf16.mxu0 %v1591_v6 }
  0xab   : > { %v819_v59 = vpop.permute.xlu0 %818  ;;  %1497 = vmatpush3.bf16.msra.mxu1 %v726_v57  ;;  %1498 = vmatprep.mubr.msk.bf16.mxu1 %vm1592_vm0, %v1590_v5  ;;  %v821_v62 = vpop.permute.xlu1 %820 }
  0xac   : > { %v824_v61 = vsel %vm822_vm7, %v817_v58, %v819_v59  ;;  %1502 = vmatprep.subr.bf16.mxu1 %v1590_v5  ;;  %v825_v63 = vsel %vm822_vm7, %v819_v59, %v821_v62 }
  0xad   : > { %1436 = vmatprep.subr.msk.bf16.mxu0 %vm298_vm2, %v824_v61  ;;  %v836_v3 = vsel %vm298_vm2, %v825_v63, 0 }
  0xaf   : > { %v925_v2 = vpop.permute.xlu0 %924  ;;  %v927_v4 = vpop.permute.xlu1 %926 }
  0xb0   : > { %v933_v8 = vsel %vm932_vm8, %v925_v2, %v927_v4 }
  0xb1   : > { %1433 = vmatmul.mubr.msk.bf16.vlgmr.msra.gmra.mxu0 %vm294_vm3, %v1431_v0  ;;  %1499 = vmatmul.mubr.msk.bf16.vlgmr.msra.gmra.mxu1 %vm294_vm3, %v1431_v0  ;;  %v940_v13 = vsel %vm298_vm2, %v933_v8, 0 }
  0xb2   : > { %853 = vmatpush1.bf16.msra.mxu0 %v830_v1  ;;  %870 = vmatprep.mubr.bf16.mxu0 %v1591_v6 }
  0xb3   : > { %v929_v7 = vpop.permute.xlu0 %928  ;;  %1503 = vmatpush3.bf16.msra.mxu1 %v836_v3  ;;  %1504 = vmatprep.mubr.msk.bf16.mxu1 %vm1592_vm0, %v1590_v5  ;;  %v931_v10 = vpop.permute.xlu1 %930 }
  0xb4   : > { %v934_v9 = vsel %vm932_vm8, %v927_v4, %v929_v7  ;;  %1508 = vmatprep.subr.bf16.mxu1 %v1590_v5  ;;  %v935_v11 = vsel %vm932_vm8, %v929_v7, %v931_v10 }
  0xb5   : > { %1440 = vmatprep.subr.msk.bf16.mxu0 %vm298_vm2, %v934_v9  ;;  %v946_v15 = vsel %vm298_vm2, %v935_v11, 0 }
  0xb7   : > { %v1035_v14 = vpop.permute.xlu0 %1034  ;;  %v1037_v16 = vpop.permute.xlu1 %1036 }
  0xb8   : > { %v1043_v18 = vsel %vm1042_vm9, %v1035_v14, %v1037_v16 }
  0xb9   : > { %1437 = vmatmul.mubr.msk.bf16.vlgmr.msra.gmra.mxu0 %vm294_vm3, %v1435_v12  ;;  %1505 = vmatmul.mubr.msk.bf16.vlgmr.msra.gmra.mxu1 %vm294_vm3, %v1435_v12  ;;  %v1050_v23 = vsel %vm298_vm2, %v1043_v18, 0 }
  0xba   : > { %963 = vmatpush1.bf16.msra.mxu0 %v940_v13  ;;  %980 = vmatprep.mubr.bf16.mxu0 %v1591_v6 }
  0xbb   : > { %v1039_v17 = vpop.permute.xlu0 %1038  ;;  %1509 = vmatpush3.bf16.msra.mxu1 %v946_v15  ;;  %1510 = vmatprep.mubr.msk.bf16.mxu1 %vm1592_vm0, %v1590_v5  ;;  %v1041_v20 = vpop.permute.xlu1 %1040 }
  0xbc   : > { %v1044_v19 = vsel %vm1042_vm9, %v1037_v16, %v1039_v17  ;;  %1514 = vmatprep.subr.bf16.mxu1 %v1590_v5  ;;  %v1045_v21 = vsel %vm1042_vm9, %v1039_v17, %v1041_v20 }
  0xbd   : > { %1444 = vmatprep.subr.msk.bf16.mxu0 %vm298_vm2, %v1044_v19  ;;  %v1056_v25 = vsel %vm298_vm2, %v1045_v21, 0 }
  0xbf   : > { %v1145_v24 = vpop.permute.xlu0 %1144  ;;  %v1147_v26 = vpop.permute.xlu1 %1146 }
  0xc0   : > { %v1153_v28 = vsel %vm1152_vm10, %v1145_v24, %v1147_v26 }
  0xc1   : > { %1441 = vmatmul.mubr.msk.bf16.vlgmr.msra.gmra.mxu0 %vm294_vm3, %v1439_v22  ;;  %1511 = vmatmul.mubr.msk.bf16.vlgmr.msra.gmra.mxu1 %vm294_vm3, %v1439_v22  ;;  %v1160_v33 = vsel %vm298_vm2, %v1153_v28, 0 }
  0xc2   : > { %1073 = vmatpush1.bf16.msra.mxu0 %v1050_v23  ;;  %1090 = vmatprep.mubr.bf16.mxu0 %v1591_v6 }
  0xc3   : > { %v1149_v27 = vpop.permute.xlu0 %1148  ;;  %1515 = vmatpush3.bf16.msra.mxu1 %v1056_v25  ;;  %1516 = vmatprep.mubr.msk.bf16.mxu1 %vm1592_vm0, %v1590_v5  ;;  %v1151_v30 = vpop.permute.xlu1 %1150 }
  0xc4   : > { %v1154_v29 = vsel %vm1152_vm10, %v1147_v26, %v1149_v27  ;;  %1520 = vmatprep.subr.bf16.mxu1 %v1590_v5  ;;  %v1155_v31 = vsel %vm1152_vm10, %v1149_v27, %v1151_v30 }
  0xc5   : > { %1448 = vmatprep.subr.msk.bf16.mxu0 %vm298_vm2, %v1154_v29  ;;  %v1166_v34 = vsel %vm298_vm2, %v1155_v31, 0 }
  0xc9   : > { %1445 = vmatmul.mubr.msk.bf16.vlgmr.msra.gmra.mxu0 %vm294_vm3, %v1443_v32  ;;  %1517 = vmatmul.mubr.msk.bf16.vlgmr.msra.gmra.mxu1 %vm294_vm3, %v1443_v32 }
  0xca   : > { %1183 = vmatpush1.bf16.msra.mxu0 %v1160_v33  ;;  %1200 = vmatprep.mubr.bf16.mxu0 %v1591_v6 }
  0xcb   : > { %1521 = vmatpush3.bf16.msra.mxu1 %v1166_v34  ;;  %1522 = vmatprep.mubr.msk.bf16.mxu1 %vm1592_vm0, %v1590_v5 }
  0xd1   : > { %1449 = vmatmul.mubr.msk.bf16.vlgmr.msra.gmra.mxu0 %vm294_vm3, %v1447_v35  ;;  %1523 = vmatmul.mubr.msk.bf16.vlgmr.msra.gmra.mxu1 %vm294_vm3, %v1447_v35 }
 0x151   : > { %v342_v36 = vpop.f32.mrf.mxu0  ;;  %v383_v38 = vpop.f32.mrf.mxu1 }
 0x153   : > { %v344_v37 = vpop.f32.mrf.mxu0  ;;  %v1476_v40 = vpop.f32.mrf.mxu1 }
 0x155   : > { %v346_v39 = vpop.f32.mrf.mxu0  ;;  %v386_v41 = vpop.f32.mrf.mxu1 }
 0x157   : > { %v347_v6 = vpop.f32.mrf.mxu0  ;;  %v1477_v42 = vpop.f32.mrf.mxu1 }
 0x159   : > { %v435_v43 = vpop.f32.mrf.mxu0  ;;  %v476_v45 = vpop.f32.mrf.mxu1 }
 0x15a   : > { %v436_v23 = vadd.f32 %v435_v43, %v342_v36  ;;  %v477_v27 = vadd.f32 %v476_v45, %v383_v38 }
 0x15b   : > { %v437_v44 = vpop.f32.mrf.mxu0  ;;  %v1482_v46 = vpop.f32.mrf.mxu1 }
 0x15c   : > { %v438_v26 = vadd.f32 %v437_v44, %v344_v37 }
 0x15d   : > { %v439_v5 = vpop.f32.mrf.mxu0  ;;  %v479_v48 = vpop.f32.mrf.mxu1 }
 0x15f   : > { %v440_v47 = vpop.f32.mrf.mxu0  ;;  %v1483_v49 = vpop.f32.mrf.mxu1 }
 0x161   : > { %v542_v50 = vpop.f32.mrf.mxu0  ;;  %v583_v52 = vpop.f32.mrf.mxu1 }
 0x162   : > { %v589_v28 = vadd.f32 %v542_v50, %v436_v23  ;;  %v591_v32 = vadd.f32 %v583_v52, %v477_v27  ;;  %v1256_v52 = vpop.permute.xlu0 %1255 }
 0x163   : > { %v544_v51 = vpop.f32.mrf.mxu0  ;;  %v1488_v54 = vpop.f32.mrf.mxu1 }
 0x164   : > { %v590_v31 = vadd.f32 %v544_v51, %v438_v26 }
 0x165   : > { %v546_v53 = vpop.f32.mrf.mxu0  ;;  %v586_v56 = vpop.f32.mrf.mxu1 }
 0x167   : > { %v547_v55 = vpop.f32.mrf.mxu0  ;;  %v1489_v57 = vpop.f32.mrf.mxu1 }
 0x169   : > { %v652_v58 = vpop.f32.mrf.mxu0  ;;  %v693_v60 = vpop.f32.mrf.mxu1 }
 0x16a   : > { %v699_v33 = vadd.f32 %v652_v58, %v589_v28  ;;  %v701_v40 = vadd.f32 %v693_v60, %v591_v32 }
 0x16b   : > { %v654_v59 = vpop.f32.mrf.mxu0  ;;  %v1494_v62 = vpop.f32.mrf.mxu1 }
 0x16c   : > { %v700_v39 = vadd.f32 %v654_v59, %v590_v31 }
 0x16d   : > { %v656_v61 = vpop.f32.mrf.mxu0  ;;  %v696_v0 = vpop.f32.mrf.mxu1 }
 0x16f   : > { %v657_v63 = vpop.f32.mrf.mxu0  ;;  %v1495_v1 = vpop.f32.mrf.mxu1 }
 0x171   : > { %v762_v2 = vpop.f32.mrf.mxu0  ;;  %v803_v4 = vpop.f32.mrf.mxu1 }
 0x172   : > { %v809_v6 = vadd.f32 %v762_v2, %v699_v33  ;;  %v811_v36 = vadd.f32 %v803_v4, %v701_v40 }
 0x173   : > { %v764_v3 = vpop.f32.mrf.mxu0  ;;  %v1500_v8 = vpop.f32.mrf.mxu1 }
 0x174   : > { %v810_v5 = vadd.f32 %v764_v3, %v700_v39 }
 0x175   : > { %v766_v7 = vpop.f32.mrf.mxu0  ;;  %v806_v10 = vpop.f32.mrf.mxu1 }
 0x177   : > { %v767_v9 = vpop.f32.mrf.mxu0  ;;  %v1501_v11 = vpop.f32.mrf.mxu1 }
 0x179   : > { %v872_v12 = vpop.f32.mrf.mxu0  ;;  %v913_v14 = vpop.f32.mrf.mxu1 }
 0x17a   : > { %v919_v43 = vadd.f32 %v872_v12, %v809_v6  ;;  %v921_v44 = vadd.f32 %v913_v14, %v811_v36 }
 0x17b   : > { %v874_v13 = vpop.f32.mrf.mxu0  ;;  %v1506_v16 = vpop.f32.mrf.mxu1 }
 0x17c   : > { %v920_v38 = vadd.f32 %v874_v13, %v810_v5 }
 0x17d   : > { %v876_v15 = vpop.f32.mrf.mxu0  ;;  %v916_v18 = vpop.f32.mrf.mxu1 }
 0x17f   : > { %v877_v17 = vpop.f32.mrf.mxu0  ;;  %v1507_v19 = vpop.f32.mrf.mxu1 }
 0x181   : > { %v982_v20 = vpop.f32.mrf.mxu0  ;;  %v1023_v22 = vpop.f32.mrf.mxu1 }
 0x182   : > { %v1029_v45 = vadd.f32 %v982_v20, %v919_v43  ;;  %v1031_v50 = vadd.f32 %v1023_v22, %v921_v44 }
 0x183   : > { %v984_v21 = vpop.f32.mrf.mxu0  ;;  %v1512_v25 = vpop.f32.mrf.mxu1 }
 0x184   : > { %v1030_v49 = vadd.f32 %v984_v21, %v920_v38 }
 0x185   : > { %v986_v24 = vpop.f32.mrf.mxu0  ;;  %v1026_v30 = vpop.f32.mrf.mxu1 }
 0x187   : > { %v987_v29 = vpop.f32.mrf.mxu0  ;;  %v1513_v34 = vpop.f32.mrf.mxu1 }
 0x189   : > { %v1092_v35 = vpop.f32.mrf.mxu0  ;;  %v1133_v42 = vpop.f32.mrf.mxu1 }
 0x18a   : > { %v1139_v51 = vadd.f32 %v1092_v35, %v1029_v45  ;;  %v1141_v56 = vadd.f32 %v1133_v42, %v1031_v50 }
 0x18b   : > { %v1094_v41 = vpop.f32.mrf.mxu0  ;;  %v1518_v37 = vpop.f32.mrf.mxu1 }
 0x18c   : > { %v1140_v55 = vadd.f32 %v1094_v41, %v1030_v49 }
 0x18d   : > { %v1096_v46 = vpop.f32.mrf.mxu0  ;;  %v1136_v48 = vpop.f32.mrf.mxu1 }
 0x18f   : > { %v1097_v47 = vpop.f32.mrf.mxu0  ;;  %v1519_v53 = vpop.f32.mrf.mxu1 }
 0x191   : > { %v1202_v54 = vpop.f32.mrf.mxu0  ;;  %v1243_v59 = vpop.f32.mrf.mxu1 }
 0x192   : > { %v1249_v57 = vadd.f32 %v1202_v54, %v1139_v51  ;;  %v1251_v62 = vadd.f32 %v1243_v59, %v1141_v56 }
 0x193   : > { %v1204_v58 = vpop.f32.mrf.mxu0  ;;  %v1524_v0 = vpop.f32.mrf.mxu1 }
 0x194   : > { %v1258_v60 = vadd.f32 %v1256_v52, %v1249_v57  ;;  %v1250_v61 = vadd.f32 %v1204_v58, %v1140_v55  ;;  %v1260_v3 = vadd.f32 %v1256_v52, %v1251_v62 }
 0x195   : > { %v1206_v63 = vpop.f32.mrf.mxu0  ;;  %v1246_v7 = vpop.f32.mrf.mxu1 }
 0x196   : > { %v1261_v1 = vmax.f32 %v1258_v60, 0.0  ;;  %v1259_v2 = vadd.f32 %v1256_v52, %v1250_v61  ;;  %v1263_v9 = vmax.f32 %v1260_v3, 0.0 }
 0x197   : > { %v1207_v4 = vpop.f32.mrf.mxu0  ;;  %v1525_v10 = vpop.f32.mrf.mxu1 }
 0x198   : > { %1264 = vst [vmem:[%s257_s28] sm:$0xff] %v1261_v1  ;;  %v1262_v8 = vmax.f32 %v1259_v2, 0.0  ;;  %1266 = vst [vmem:[%s257_s28 + $0x10] sm:$0xff] %v1263_v9 }
 0x19a   : > { %1265 = vst [vmem:[%s257_s28 + $0x8] sm:$0xff] %v1262_v8 }
 0x19b PF: > { %s13_s14 = sadd.s32 1, %s1587_s14   ;;  %s1800_s12 = smov %s1583_s13 }
 0x19c   : > { %p10_p5 = scmp.ge.s32.totalorder %s13_s14, 4   ;;  %s1801_s13 = smov %s1803_s15 }
 0x19e   :  { %12 = sbr.rel (!%p10_p5) target bundleno = 2 (0x2), region = 76 }

</bundles_post_ra>
